<compile_context>
chip_gen: v7x
topology: tpu7x:2x2x1
jax: 0.10.0
libtpu: 0.0.40
codegen_flags: <defaults>
</compile_context>

<pallas_src>
import functools
import math

import jax
import jax.numpy as jnp
from jax.experimental import pallas as pl
from jax.experimental.pallas import tpu as pltpu

GNN_GLOBAL_ABLATION = "Nogly"
LOC = False


def _embeddings_kernel(ids_ref, tab_hi_ref, tab_lo_ref, pos_ref,
                       gamma_ref, beta_ref, out_ref, *, eps):
    """One row-block: fused 3-way embedding gather (bf16 one-hot matmuls, hi/lo
    split for f32 accuracy) + absolute-position add + LayerNorm."""
    ids = ids_ref[...]                                    # (BM, 3) int32, combined-vocab ids
    bm = ids.shape[0]
    vpad = tab_hi_ref.shape[0]                            # combined vocab padded to mult of 128

    # One hoisted iota; the three id streams live in disjoint vocab ranges, so
    # the OR of the matches equals the sum of the three one-hots.
    iota = jax.lax.broadcasted_iota(jnp.int32, (bm, vpad), 1)
    hit = ((ids[:, 0:1] == iota) | (ids[:, 1:2] == iota) | (ids[:, 2:3] == iota))
    onehot = hit.astype(jnp.bfloat16)                     # 0/1 exact in bf16

    # a_emb[tok] + phos_emb[dec'] + charge_emb[chg]  (two single-pass bf16 MXU
    # matmuls, f32 accumulation; hi + lo reconstructs f32 table values to ~2^-16 rel).
    emb = jnp.dot(onehot, tab_hi_ref[...], preferred_element_type=jnp.float32)
    emb = emb + jnp.dot(onehot, tab_lo_ref[...], preferred_element_type=jnp.float32)

    # + position_emb[arange(L)] (constant f32 tile, period L, bm % L == 0).
    emb = emb + pos_ref[...]

    # LayerNorm over hidden dim.
    mean = jnp.mean(emb, axis=-1, keepdims=True)
    centered = emb - mean
    var = jnp.mean(centered * centered, axis=-1, keepdims=True)
    normed = centered * jax.lax.rsqrt(var + eps)
    out_ref[...] = (normed * gamma_ref[...] + beta_ref[...]).astype(out_ref.dtype)


def acid_bert_embeddings(peptide_tokens, decoration, charge, params,
                         *, eps=1e-12, block_m=2048, out_dtype=jnp.float32):
    """peptide_tokens, decoration: (N, L) int32; charge: (N,) int32."""
    N, L = peptide_tokens.shape
    H = params["a_emb"].shape[1]
    M = N * L

    v_a = params["a_emb"].shape[0]
    v_phos = params["phos_emb"].shape[0]
    v_chg = params["charge_emb"].shape[0]
    max_pos = params["pos_emb"].shape[0]
    assert L <= max_pos

    # ---- combined gather table (a / phos / charge only); hi/lo bf16 split ----
    tab = jnp.concatenate(
        [params["a_emb"], params["phos_emb"], params["charge_emb"]],
        axis=0).astype(jnp.float32)
    v_total = tab.shape[0]
    v_pad = ((v_total + 127) // 128) * 128
    tab = jnp.pad(tab, ((0, v_pad - v_total), (0, 0)))
    tab_hi = tab.astype(jnp.bfloat16)
    tab_lo = (tab - tab_hi.astype(jnp.float32)).astype(jnp.bfloat16)

    off_phos = v_a
    off_chg = v_a + v_phos

    # ---- flattened, offset id streams packed into one (M, 3) int32 array ----
    tok_ids = peptide_tokens.reshape(M).astype(jnp.int32)
    dec = decoration.astype(jnp.int32)
    if not LOC:
        dec = dec - 5 * (dec == 5).astype(jnp.int32)
    dec_ids = dec.reshape(M) + off_phos
    chg_ids = jnp.repeat(charge.astype(jnp.int32), L) + off_chg   # charge.unsqueeze(1).expand(N, L)
    ids = jnp.stack([tok_ids, dec_ids, chg_ids], axis=1)          # (M, 3)

    # ---- row blocking: bm multiple of lcm(8, L), large by default, VMEM-capped ----
    tile_unit = math.lcm(8, L)
    m_ceil = -(-M // tile_unit) * tile_unit
    bm = max(tile_unit, (block_m // tile_unit) * tile_unit)
    bm = min(bm, m_ceil)

    def _est_vmem(b):
        return (2 * b * H * 4                 # output double buffer
                + 2 * b * H * 4               # position tile (double-buffered constant)
                + 2 * b * 128 * 4             # ids (3 lanes pad to one 128-lane tile)
                + 2 * 2 * v_pad * H * 2)      # hi/lo bf16 tables
    budget = 24 * 1024 * 1024                 # fits v7x's 64 MiB physical VMEM with headroom
    while bm > tile_unit and _est_vmem(bm) > budget:
        bm = max(tile_unit, ((bm // 2) // tile_unit) * tile_unit)

    # Position tile: pos_emb[:L] repeated bm/L times (block start is a multiple
    # of L, so the period lines up for every block, including a ragged last one).
    pos_tile = jnp.tile(params["pos_emb"][:L].astype(jnp.float32), (bm // L, 1))

    gamma = params["ln_gamma"].reshape(1, H).astype(jnp.float32)
    beta = params["ln_beta"].reshape(1, H).astype(jnp.float32)

    grid = ((M + bm - 1) // bm,)
    out = pl.pallas_call(
        functools.partial(_embeddings_kernel, eps=eps),
        out_shape=jax.ShapeDtypeStruct((M, H), out_dtype),        # exact M: no post-slice copy
        grid_spec=pltpu.PrefetchScalarGridSpec(
            num_scalar_prefetch=0,
            grid=grid,
            in_specs=[
                pl.BlockSpec((bm, 3), lambda i: (i, 0)),          # packed ids
                pl.BlockSpec((v_pad, H), lambda i: (0, 0)),       # combined table (hi), constant
                pl.BlockSpec((v_pad, H), lambda i: (0, 0)),       # combined table (lo), constant
                pl.BlockSpec((bm, H), lambda i: (0, 0)),          # position tile, constant
                pl.BlockSpec((1, H), lambda i: (0, 0)),           # gamma
                pl.BlockSpec((1, H), lambda i: (0, 0)),           # beta
            ],
            out_specs=pl.BlockSpec((bm, H), lambda i: (i, 0)),
        ),
        compiler_params=pltpu.CompilerParams(
            dimension_semantics=("parallel",),
            vmem_limit_bytes=48 * 1024 * 1024),
    )(ids, tab_hi, tab_lo, pos_tile, gamma, beta)

    return out.reshape(N, L, H)
    # dropout: identity in eval mode


def _reference(peptide_tokens, decoration, charge, params, eps=1e-12):
    N, L = peptide_tokens.shape
    dec = decoration
    if not LOC:
        dec = dec - 5 * (dec == 5).astype(jnp.int32)
    a_e = params["a_emb"][peptide_tokens]
    p_e = params["phos_emb"][dec]
    c_e = params["charge_emb"][charge][:, None, :].repeat(L, axis=1)
    pos_e = params["pos_emb"][jnp.arange(L)][None].repeat(N, axis=0)
    emb = a_e + p_e + c_e + pos_e
    mu = emb.mean(-1, keepdims=True)
    var = ((emb - mu) ** 2).mean(-1, keepdims=True)
    return (emb - mu) / jnp.sqrt(var + eps) * params["ln_gamma"] + params["ln_beta"]


if __name__ == "__main__":
    # Small config consistent with the module (hidden size a multiple of 128 so
    # the output store path is lane-dense, as in the real model).
    N, L, H = 2, 8, 128
    MAX_POS, V_A, V_CHG, V_PHOS = 64, 30, 10, 10
    EPS = 1e-12

    key = jax.random.PRNGKey(0)
    k = jax.random.split(key, 8)

    def emb_table(kk, v, h, padding_idx=None):
        t = 0.02 * jax.random.normal(kk, (v, h), dtype=jnp.float32)
        if padding_idx is not None:
            t = t.at[padding_idx].set(0.0)
        return t

    params = {
        "pos_emb":    emb_table(k[0], MAX_POS, H),
        "charge_emb": emb_table(k[1], V_CHG, H, padding_idx=0),
        "a_emb":      emb_table(k[2], V_A, H, padding_idx=0),
        "phos_emb":   emb_table(k[3], V_PHOS, H),
        "ln_gamma":   jnp.ones((H,), jnp.float32),
        "ln_beta":    jnp.zeros((H,), jnp.float32),
    }

    peptide_tokens = jax.random.randint(k[4], (N, L), 1, V_A, dtype=jnp.int32)
    decoration = jax.random.randint(k[5], (N, L), 0, 6, dtype=jnp.int32)
    charge = jax.random.randint(k[6], (N,), 1, V_CHG, dtype=jnp.int32)

    out = acid_bert_embeddings(peptide_tokens, decoration, charge, params, eps=EPS)
    out = jax.block_until_ready(out)

    ref = _reference(peptide_tokens, decoration, charge, params, eps=EPS)
    assert out.shape == (N, L, H)
    # Tolerance reflects the hi/lo bf16 table split: per-element gather error is
    # <= ~2^-16 relative before LayerNorm (worst case a few 1e-4 after the 1/std
    # rescale), far below a plain-bf16 table's ~1e-3.
    assert jnp.allclose(out, ref, atol=1e-3, rtol=1e-3), "mismatch vs reference"

    print("KERNEL_OK")
</pallas_src>

<mosaic_0001>
module attributes {stable_mosaic.version = 11 : i64} {
  func.func @_embeddings_kernel(%arg0: i32, %arg1: memref<16x3xi32, #tpu.memory_space<vmem>>, %arg2: memref<128x128xbf16, #tpu.memory_space<vmem>>, %arg3: memref<128x128xbf16, #tpu.memory_space<vmem>>, %arg4: memref<16x128xf32, #tpu.memory_space<vmem>>, %arg5: memref<1x128xf32, #tpu.memory_space<vmem>>, %arg6: memref<1x128xf32, #tpu.memory_space<vmem>>, %arg7: memref<16x128xf32, #tpu.memory_space<vmem>>) attributes {dimension_semantics = [#tpu.dimension_semantics<parallel>], iteration_bounds = array<i64: 1>, scalar_prefetch = 0 : i64, scratch_operands = 0 : i64, tpu.core_type = #tpu.core_type<tc>, window_params = [{transform_indices = @transform_0, window_bounds = array<i64: 16, 3>}, {pipeline_mode = #tpu.pipeline_mode<synchronous>, transform_indices = @transform_1, window_bounds = array<i64: 128, 128>}, {pipeline_mode = #tpu.pipeline_mode<synchronous>, transform_indices = @transform_2, window_bounds = array<i64: 128, 128>}, {pipeline_mode = #tpu.pipeline_mode<synchronous>, transform_indices = @transform_3, window_bounds = array<i64: 16, 128>}, {pipeline_mode = #tpu.pipeline_mode<synchronous>, transform_indices = @transform_4, window_bounds = array<i64: 1, 128>}, {pipeline_mode = #tpu.pipeline_mode<synchronous>, transform_indices = @transform_5, window_bounds = array<i64: 1, 128>}, {transform_indices = @transform_6, window_bounds = array<i64: 16, 128>}]} {
    %c0 = arith.constant 0 : index
    %c0_0 = arith.constant 0 : index
    %0 = vector.load %arg1[%c0, %c0_0] : memref<16x3xi32, #tpu.memory_space<vmem>>, vector<16x3xi32>
    %1 = tpu.iota {dimensions = array<i32: 1>} : vector<16x128xi32>
    %2 = vector.extract_strided_slice %0 {offsets = [0, 0], sizes = [16, 1], strides = [1, 1]} : vector<16x3xi32> to vector<16x1xi32>
    %3 = vector.broadcast %2 : vector<16x1xi32> to vector<16x128xi32>
    %4 = arith.cmpi eq, %3, %1 : vector<16x128xi32>
    %5 = vector.extract_strided_slice %0 {offsets = [0, 1], sizes = [16, 1], strides = [1, 1]} : vector<16x3xi32> to vector<16x1xi32>
    %6 = vector.broadcast %5 : vector<16x1xi32> to vector<16x128xi32>
    %7 = arith.cmpi eq, %6, %1 : vector<16x128xi32>
    %8 = arith.ori %4, %7 : vector<16x128xi1>
    %9 = vector.extract_strided_slice %0 {offsets = [0, 2], sizes = [16, 1], strides = [1, 1]} : vector<16x3xi32> to vector<16x1xi32>
    %10 = vector.broadcast %9 : vector<16x1xi32> to vector<16x128xi32>
    %11 = arith.cmpi eq, %10, %1 : vector<16x128xi32>
    %12 = arith.ori %8, %11 : vector<16x128xi1>
    %13 = arith.extui %12 : vector<16x128xi1> to vector<16x128xi32>
    %14 = arith.sitofp %13 : vector<16x128xi32> to vector<16x128xf32>
    %15 = arith.truncf %14 : vector<16x128xf32> to vector<16x128xbf16>
    %c0_1 = arith.constant 0 : index
    %c0_2 = arith.constant 0 : index
    %16 = vector.load %arg2[%c0_1, %c0_2] : memref<128x128xbf16, #tpu.memory_space<vmem>>, vector<128x128xbf16>
    %cst = arith.constant dense<0.000000e+00> : vector<16x128xf32>
    %17 = tpu.matmul %15, %16, %cst {dimension_numbers = #tpu.dot_dimension_numbers<[1], [0], [0], [1], [0, 0, 1, 1], [], []>} : vector<16x128xbf16>, vector<128x128xbf16>, vector<16x128xf32> -> vector<16x128xf32>
    %c0_3 = arith.constant 0 : index
    %c0_4 = arith.constant 0 : index
    %18 = vector.load %arg3[%c0_3, %c0_4] : memref<128x128xbf16, #tpu.memory_space<vmem>>, vector<128x128xbf16>
    %cst_5 = arith.constant dense<0.000000e+00> : vector<16x128xf32>
    %19 = tpu.matmul %15, %18, %cst_5 {dimension_numbers = #tpu.dot_dimension_numbers<[1], [0], [0], [1], [0, 0, 1, 1], [], []>} : vector<16x128xbf16>, vector<128x128xbf16>, vector<16x128xf32> -> vector<16x128xf32>
    %20 = arith.addf %17, %19 : vector<16x128xf32>
    %c0_6 = arith.constant 0 : index
    %c0_7 = arith.constant 0 : index
    %21 = vector.load %arg4[%c0_6, %c0_7] : memref<16x128xf32, #tpu.memory_space<vmem>>, vector<16x128xf32>
    %22 = arith.addf %20, %21 : vector<16x128xf32>
    %cst_8 = arith.constant dense<0.000000e+00> : vector<16xf32>
    %23 = vector.multi_reduction <add>, %22, %cst_8 [1] : vector<16x128xf32> to vector<16xf32>
    %24 = vector.shape_cast %23 : vector<16xf32> to vector<16x1xf32>
    %cst_9 = arith.constant 1.280000e+02 : f32
    %25 = vector.broadcast %cst_9 : f32 to vector<16x1xf32>
    %26 = arith.divf %24, %25 : vector<16x1xf32>
    %27 = vector.broadcast %26 : vector<16x1xf32> to vector<16x128xf32>
    %28 = arith.subf %22, %27 : vector<16x128xf32>
    %29 = arith.mulf %28, %28 : vector<16x128xf32>
    %cst_10 = arith.constant dense<0.000000e+00> : vector<16xf32>
    %30 = vector.multi_reduction <add>, %29, %cst_10 [1] : vector<16x128xf32> to vector<16xf32>
    %31 = vector.shape_cast %30 : vector<16xf32> to vector<16x1xf32>
    %cst_11 = arith.constant 1.280000e+02 : f32
    %32 = vector.broadcast %cst_11 : f32 to vector<16x1xf32>
    %33 = arith.divf %31, %32 : vector<16x1xf32>
    %cst_12 = arith.constant 9.99999996E-13 : f32
    %34 = vector.broadcast %cst_12 : f32 to vector<16x1xf32>
    %35 = arith.addf %33, %34 : vector<16x1xf32>
    %36 = math.rsqrt %35 : vector<16x1xf32>
    %37 = vector.broadcast %36 : vector<16x1xf32> to vector<16x128xf32>
    %38 = arith.mulf %28, %37 : vector<16x128xf32>
    %c0_13 = arith.constant 0 : index
    %c0_14 = arith.constant 0 : index
    %39 = vector.load %arg5[%c0_13, %c0_14] : memref<1x128xf32, #tpu.memory_space<vmem>>, vector<1x128xf32>
    %40 = vector.broadcast %39 : vector<1x128xf32> to vector<16x128xf32>
    %41 = arith.mulf %38, %40 : vector<16x128xf32>
    %c0_15 = arith.constant 0 : index
    %c0_16 = arith.constant 0 : index
    %42 = vector.load %arg6[%c0_15, %c0_16] : memref<1x128xf32, #tpu.memory_space<vmem>>, vector<1x128xf32>
    %43 = vector.broadcast %42 : vector<1x128xf32> to vector<16x128xf32>
    %44 = arith.addf %41, %43 : vector<16x128xf32>
    %c0_17 = arith.constant 0 : index
    %c0_18 = arith.constant 0 : index
    %45 = vector.load %arg7[%c0_17, %c0_18] : memref<16x128xf32, #tpu.memory_space<vmem>>, vector<16x128xf32>
    tpu.vector_store %arg7[%c0_17, %c0_18], %44 {strides = array<i32>} : memref<16x128xf32, #tpu.memory_space<vmem>>, vector<16x128xf32>,
    return
  }
  func.func @transform_0(%arg0: i32) -> (i32, i32) {
    %c0_i32 = arith.constant 0 : i32
    %c0_i32_0 = arith.constant 0 : i32
    return %arg0, %c0_i32 : i32, i32
  }
  func.func @transform_1(%arg0: i32) -> (i32, i32) {
    %c0_i32 = arith.constant 0 : i32
    %c0_i32_0 = arith.constant 0 : i32
    %c0_i32_1 = arith.constant 0 : i32
    return %c0_i32, %c0_i32_0 : i32, i32
  }
  func.func @transform_2(%arg0: i32) -> (i32, i32) {
    %c0_i32 = arith.constant 0 : i32
    %c0_i32_0 = arith.constant 0 : i32
    %c0_i32_1 = arith.constant 0 : i32
    return %c0_i32, %c0_i32_0 : i32, i32
  }
  func.func @transform_3(%arg0: i32) -> (i32, i32) {
    %c0_i32 = arith.constant 0 : i32
    %c0_i32_0 = arith.constant 0 : i32
    %c0_i32_1 = arith.constant 0 : i32
    return %c0_i32, %c0_i32_0 : i32, i32
  }
  func.func @transform_4(%arg0: i32) -> (i32, i32) {
    %c0_i32 = arith.constant 0 : i32
    %c0_i32_0 = arith.constant 0 : i32
    %c0_i32_1 = arith.constant 0 : i32
    return %c0_i32, %c0_i32_0 : i32, i32
  }
  func.func @transform_5(%arg0: i32) -> (i32, i32) {
    %c0_i32 = arith.constant 0 : i32
    %c0_i32_0 = arith.constant 0 : i32
    %c0_i32_1 = arith.constant 0 : i32
    return %c0_i32, %c0_i32_0 : i32, i32
  }
  func.func @transform_6(%arg0: i32) -> (i32, i32) {
    %c0_i32 = arith.constant 0 : i32
    %c0_i32_0 = arith.constant 0 : i32
    return %arg0, %c0_i32 : i32, i32
  }
}

</mosaic_0001>

<bundles_post_ra>
// kernel: tpu_custom_call.1
= control target key start
LH: loop header
LB: loop body
LE: loop exit
PB: predicated region body
PF: predicated region fallthrough
CT: control target
= control target key end

     0   :  { %11 = vsyncpa [#allocation3], 0  ;;  %s658_s0 = inlined_call_operand.vmem [shape: s32[16,3], index: 0, kind: input, shape index: {}]   ;;  %s659_s1 = inlined_call_operand.hbm [shape: bf16[128,128], index: 1, kind: input, shape index: {}]   ;;  %s660_s2 = inlined_call_operand.hbm [shape: bf16[128,128], index: 2, kind: input, shape index: {}]   ;;  %s661_s3 = inlined_call_operand.vmem [shape: f32[16,128], index: 3, kind: input, shape index: {}]   ;;  %s662_s4 = inlined_call_operand.vmem [shape: f32[1,128], index: 4, kind: input, shape index: {}]   ;;  %s663_s5 = inlined_call_operand.vmem [shape: f32[1,128], index: 5, kind: input, shape index: {}]   ;;  %s664_s6 = inlined_call_operand.hbm [shape: f32[16,128], index: 6, kind: output, shape index: {}]  }
   0x1   :  { %12 = vsyncpa [#allocation6], 0 }
   0x2   :  { %13 = vsyncpa [#allocation4], 0  ;;  %s556_s21 = smov [#allocation2]   ;;  %s484_s25 = scalar_lea.hbm %s659_s1, 1024 }
   0x3   :  { %s21_s22 = sshll.u32 %s556_s21, 4  ;;  %p485_p0 = scmp.ne.s32.totalorder %s659_s1, %s484_s25  ;;  %s22_s22 = int_to_ptr.vmem [resolvable:$true] %s21_s22 }
   0x4   :  { %p488_p1 = scmp.lt.u32.totalorder %s484_s25, %s659_s1 }
   0x6   :  { %p490_p2 = pnand %p488_p1, %p485_p0 }
   0x8   :  { %493 = shalt.err (!%p490_p2)
}
   0x9   :  { %s494_s30 = scalar_lea.vmem %s22_s22, 1024  ;;  %p499_p4 = scmp.lt.s32.totalorder %s22_s22, %s22_s22 }
   0xa   :  { %p495_p3 = scmp.ne.s32.totalorder %s22_s22, %s494_s30  ;;  %p500_p5 = scmp.lt.s32.totalorder %s494_s30, %s494_s30 }
   0xc   :  { %p501_p6 = por %p500_p5, %p499_p4 }
   0xe   :  { %p502_p7 = pnand %p501_p6, %p495_p3 }
  0x10   :  { %505 = shalt.err (!%p502_p7)
}
  0x11   :  { %s557_s7 = smov 64   ;;  %s558_s8 = smov 4  }
  0x12   :  { %27 = dma.hbm_to_vmem [thread:$0]  %s659_s1, 1024, %s22_s22, [#allocation3], %s557_s7, %s557_s7, %s558_s8  }
  0x13   :  { %s559_s11 = smov [#allocation5]   ;;  %s506_s15 = scalar_lea.hbm %s660_s2, 1024 }
  0x14   :  { %s33_s12 = sshll.u32 %s559_s11, 4  ;;  %p507_p8 = scmp.ne.s32.totalorder %s660_s2, %s506_s15  ;;  %s34_s12 = int_to_ptr.vmem [resolvable:$true] %s33_s12 }
  0x15   :  { %p510_p9 = scmp.lt.u32.totalorder %s506_s15, %s660_s2 }
  0x17   :  { %p512_p10 = pnand %p510_p9, %p507_p8 }
  0x19   :  { %515 = shalt.err (!%p512_p10)
}
  0x1a   :  { %s516_s20 = scalar_lea.vmem %s34_s12, 1024  ;;  %p521_p12 = scmp.lt.s32.totalorder %s34_s12, %s34_s12 }
  0x1b   :  { %p517_p11 = scmp.ne.s32.totalorder %s34_s12, %s516_s20  ;;  %p522_p13 = scmp.lt.s32.totalorder %s516_s20, %s516_s20 }
  0x1d   :  { %p523_p0 = por %p522_p13, %p521_p12 }
  0x1f   :  { %p524_p1 = pnand %p523_p0, %p517_p11 }
  0x21   :  { %527 = shalt.err (!%p524_p1)
}
  0x22   :  { %39 = dma.hbm_to_vmem [thread:$0]  %s660_s2, 1024, %s34_s12, [#allocation6], %s557_s7, %s557_s7, %s558_s8  }
  0x23   :  { %550 = dma.done.wait [#allocation3], 1024  }
  0x24   :  { %551 = vsyncadd [#allocation3], 4294966272 }
  0x25   :  { %552 = dma.done.wait [#allocation6], 1024  }
  0x26   :  { %553 = vsyncadd [#allocation6], 4294966272  ;;  %v560_v0 = vmov 1   ;;  %v561_v1 = vmov 0   ;;  %v562_v2 = vmov 0.0   ;;  %v53_v3 = vld [vmem:[%s658_s0] sm:$0xff]  ;;  %v55_v22 = vlaneseq }
  0x27   :  { %461 = vset.pattern.permute.xlu1 %v560_v0  ;;  %460 = vset.pattern.permute.xlu0 %v561_v1  ;;  %v54_v4 = vld [vmem:[%s658_s0 + $0x8] sm:$0xff]  ;;  %v464_v5 = vld [vmem:[#allocation5] sm:$0xff]   ;;  %v466_v7 = vld [vmem:[#allocation5 + $0x8] sm:$0xff]   ;;  %v563_v11 = vmov 2   ;;  %vm564_vm0 = vmmov 0   ;;  %s566_s7 = smov [#allocation7]  }
  0x28   :  { %407 = vmatprep.subr.bf16.mxu0 %v562_v2  ;;  %427 = vmatprep.subr.bf16.mxu1 %v562_v2  ;;  %v465_v6 = vld [vmem:[#allocation2] sm:$0xff]   ;;  %v467_v8 = vld [vmem:[#allocation2 + $0x8] sm:$0xff]   ;;  %v468_v9 = vld [vmem:[#allocation5 + $0x10] sm:$0xff]   ;;  %v56_v25 = vand.u32 127, %v55_v22  ;;  %v565_v30 = vmov 1.0|1.0  }
  0x29   :  { %66 = vperm.xlu1 %461, %v53_v3   ;;  %58 = vperm.xlu0 %460, %v53_v3   ;;  %v469_v10 = vld [vmem:[#allocation2 + $0x10] sm:$0xff]   ;;  %v470_v12 = vld [vmem:[#allocation5 + $0x18] sm:$0xff]   ;;  %v472_v14 = vld [vmem:[#allocation5 + $0x20] sm:$0xff]   ;;  %s352_s8 = sshll.u32 %s566_s7, 4  ;;  %s353_s8 = int_to_ptr.vmem [resolvable:$true] %s352_s8 }
  0x2a   :  { %408 = vmatpush3.bf16.msra.mxu0 %v464_v5  ;;  %428 = vmatpush3.bf16.msra.mxu1 %v465_v6  ;;  %v471_v13 = vld [vmem:[#allocation2 + $0x18] sm:$0xff]   ;;  %v473_v15 = vld [vmem:[#allocation2 + $0x20] sm:$0xff]   ;;  %v474_v16 = vld [vmem:[#allocation5 + $0x28] sm:$0xff]   ;;  %s528_s9 = scalar_lea.vmem %s353_s8, 256  ;;  %p533_p3 = scmp.lt.s32.totalorder %s353_s8, %s353_s8 }
  0x2b   :  { %409 = vmatprep.subr.bf16.mxu0 %v562_v2  ;;  %429 = vmatprep.subr.bf16.mxu1 %v562_v2  ;;  %v475_v17 = vld [vmem:[#allocation2 + $0x28] sm:$0xff]   ;;  %v476_v18 = vld [vmem:[#allocation5 + $0x30] sm:$0xff]   ;;  %v478_v20 = vld [vmem:[#allocation5 + $0x38] sm:$0xff]   ;;  %p529_p2 = scmp.ne.s32.totalorder %s353_s8, %s528_s9  ;;  %p534_p4 = scmp.lt.s32.totalorder %s528_s9, %s528_s9 }
  0x2c   :  { %423 = vmatprep.mubr.msk.bf16.mxu0 %vm564_vm0, %v562_v2  ;;  %443 = vmatprep.mubr.msk.bf16.mxu1 %vm564_vm0, %v562_v2  ;;  %v477_v19 = vld [vmem:[#allocation2 + $0x30] sm:$0xff]   ;;  %v479_v21 = vld [vmem:[#allocation2 + $0x38] sm:$0xff]  }
  0x2d   :  { %69 = vperm.xlu1 %461, %v54_v4   ;;  %61 = vperm.xlu0 %460, %v54_v4   ;;  %v300_v33 = vld [vmem:[%s661_s3] sm:$0xff]  ;;  %v301_v39 = vld [vmem:[%s661_s3 + $0x8] sm:$0xff]  ;;  %p535_p5 = por %p534_p4, %p533_p3 }
  0x2e   :  { %410 = vmatpush3.bf16.msra.mxu0 %v466_v7  ;;  %430 = vmatpush3.bf16.msra.mxu1 %v467_v8  ;;  %v387_v60 = vld [vmem:[%s662_s4] ss:$0 sm:$0xff] }
  0x2f   :  { %411 = vmatprep.subr.bf16.mxu0 %v562_v2  ;;  %431 = vmatprep.subr.bf16.mxu1 %v562_v2  ;;  %v388_v63 = vld [vmem:[%s663_s5] ss:$0 sm:$0xff]  ;;  %p536_p6 = pnand %p535_p5, %p529_p2 }
  0x31   :  { %463 = vset.pattern.permute.xlu1 %v563_v11  ;;  %462 = vset.pattern.permute.xlu0 %v563_v11 }
  0x32   :  { %79 = vperm.xlu1 %463, %v54_v4   ;;  %76 = vperm.xlu0 %462, %v53_v3  }
  0x33   :  { %412 = vmatpush3.bf16.msra.mxu0 %v468_v9  ;;  %432 = vmatpush3.bf16.msra.mxu1 %v469_v10 }
  0x34   :  { %413 = vmatprep.subr.bf16.mxu0 %v562_v2  ;;  %433 = vmatprep.subr.bf16.mxu1 %v562_v2 }
  0x37   :  { %414 = vmatpush3.bf16.msra.mxu0 %v470_v12  ;;  %434 = vmatpush3.bf16.msra.mxu1 %v471_v13 }
  0x38   :  { %415 = vmatprep.subr.bf16.mxu0 %v562_v2  ;;  %435 = vmatprep.subr.bf16.mxu1 %v562_v2 }
  0x3b   :  { %416 = vmatpush3.bf16.msra.mxu0 %v472_v14  ;;  %436 = vmatpush3.bf16.msra.mxu1 %v473_v15 }
  0x3c   :  { %417 = vmatprep.subr.bf16.mxu0 %v562_v2  ;;  %437 = vmatprep.subr.bf16.mxu1 %v562_v2 }
  0x3f   :  { %418 = vmatpush3.bf16.msra.mxu0 %v474_v16  ;;  %438 = vmatpush3.bf16.msra.mxu1 %v475_v17 }
  0x40   :  { %419 = vmatprep.subr.bf16.mxu0 %v562_v2  ;;  %439 = vmatprep.subr.bf16.mxu1 %v562_v2 }
  0x43   :  { %420 = vmatpush3.bf16.msra.mxu0 %v476_v18  ;;  %440 = vmatpush3.bf16.msra.mxu1 %v477_v19 }
  0x44   :  { %421 = vmatprep.subr.bf16.mxu0 %v562_v2  ;;  %441 = vmatprep.subr.bf16.mxu1 %v562_v2 }
  0x47   :  { %422 = vmatpush3.bf16.msra.mxu0 %v478_v20  ;;  %442 = vmatpush3.bf16.msra.mxu1 %v479_v21 }
  0xa8   :  { %v67_v23 = vpop.permute.xlu1 %66  ;;  %v59_v24 = vpop.permute.xlu0 %58 }
  0xa9   :  { %vm71_vm1 = vcmp.eq.s32.totalorder %v67_v23, %v56_v25  ;;  %vm63_vm2 = vcmp.eq.s32.totalorder %v59_v24, %v56_v25 }
  0xaa   :  { %vm73_vm5 = vmor %vm63_vm2, %vm71_vm1 }
  0xac   :  { %v70_v26 = vpop.permute.xlu1 %69  ;;  %v62_v27 = vpop.permute.xlu0 %61 }
  0xad   :  { %vm72_vm3 = vcmp.eq.s32.totalorder %v70_v26, %v56_v25  ;;  %vm64_vm4 = vcmp.eq.s32.totalorder %v62_v27, %v56_v25 }
  0xae   :  { %vm74_vm6 = vmor %vm64_vm4, %vm72_vm3 }
  0xb1   :  { %v80_v28 = vpop.permute.xlu1 %79  ;;  %v77_v29 = vpop.permute.xlu0 %76 }
  0xb2   :  { %vm82_vm7 = vcmp.eq.s32.totalorder %v80_v28, %v56_v25  ;;  %vm81_vm8 = vcmp.eq.s32.totalorder %v77_v29, %v56_v25 }
  0xb3   :  { %vm84_vm9 = vmor %vm74_vm6, %vm82_vm7 }
  0xb4   :  { %vm83_vm10 = vmor %vm73_vm5, %vm81_vm8 }
  0xb5   :  { %vm375_vm11 = vmpackc.low %vm84_vm9, %vm83_vm10 }
  0xb6   :  { %424 = vmatmul.mubr.msk.bf16.vlgmr.msra.gmra.mrb[0].mxu0 %vm375_vm11, %v565_v30  ;;  %444 = vmatmul.mubr.msk.bf16.vlgmr.msra.gmra.mrb[0].mxu1 %vm375_vm11, %v565_v30 }
 0x189   :  { %v204_v31 = vpop.f32.mrb[0].mxu0  ;;  %v293_v32 = vpop.f32.mrb[0].mxu1 }
 0x18a   :  { %v294_v34 = vadd.f32 %v293_v32, %v204_v31  ;;  %v425_v35 = vpop.f32.mrb[1].mxu0  ;;  %v445_v36 = vpop.f32.mrb[1].mxu1 }
 0x18b   :  { %v207_v37 = vpop.f32.mrb[2].mxu0  ;;  %v296_v38 = vpop.f32.mrb[2].mxu1 }
 0x18c   :  { %v297_v40 = vadd.f32 %v296_v38, %v207_v37  ;;  %v426_v41 = vpop.f32.mrb[3].mxu0  ;;  %v446_v42 = vpop.f32.mrb[3].mxu1  ;;  %v302_v43 = vadd.f32 %v300_v33, %v294_v34 }
 0x18e   :  { %304 = vadd.xlane.f32.xlu1 %v302_v43  ;;  %v303_v44 = vadd.f32 %v301_v39, %v297_v40 }
 0x190   :  { %306 = vadd.xlane.f32.xlu0 %v303_v44 }
 0x21b   :  { %v305_v45 = vpop.xlane.xlu1 %304 }
 0x21c   :  { %v309_v46 = vmul.f32 0.0078125, %v305_v45 }
 0x21d   :  { %v307_v47 = vpop.xlane.xlu0 %306 }
 0x21e   :  { %v311_v48 = vsub.f32 %v302_v43, %v309_v46  ;;  %v310_v49 = vmul.f32 0.0078125, %v307_v47 }
 0x220   :  { %v312_v50 = vsub.f32 %v303_v44, %v310_v49  ;;  %v313_v51 = vmul.f32 %v311_v48, %v311_v48 }
 0x222   :  { %315 = vadd.xlane.f32.xlu0 %v313_v51  ;;  %v314_v52 = vmul.f32 %v312_v50, %v312_v50 }
 0x224   :  { %317 = vadd.xlane.f32.xlu1 %v314_v52 }
 0x2af   :  { %v316_v53 = vpop.xlane.xlu0 %315 }
 0x2b0   :  { %v319_v54 = vmul.f32 0.0078125, %v316_v53 }
 0x2b1   :  { %v318_v55 = vpop.xlane.xlu1 %317 }
 0x2b2   :  { %v321_v56 = vadd.f32 1e-12, %v319_v54  ;;  %v320_v57 = vmul.f32 0.0078125, %v318_v55 }
 0x2b4   :  { %480 = vrsqrt.f32 %v321_v56  ;;  %v322_v58 = vadd.f32 1e-12, %v320_v57 }
 0x2b6   :  { %482 = vrsqrt.f32 %v322_v58 }
 0x2be   :  { %v481_v59 = vpop.eup %480 }
 0x2bf   :  { %v325_v61 = vmul.f32 %v481_v59, %v311_v48 }
 0x2c0   :  { %v483_v62 = vpop.eup %482 }
 0x2c1   :  { %v326_v0 = vmul.f32 %v483_v62, %v312_v50  ;;  %v334_v1 = vmul.f32 %v387_v60, %v325_v61 }
 0x2c3   :  { %v335_v2 = vmul.f32 %v387_v60, %v326_v0  ;;  %v343_v3 = vadd.f32 %v388_v63, %v334_v1 }
 0x2c5   :  { %v344_v4 = vadd.f32 %v388_v63, %v335_v2  ;;  %345 = vst [vmem:[#allocation7] sm:$0xff] %v343_v3 }
 0x2c7   :  { %346 = vst [vmem:[#allocation7 + $0x8] sm:$0xff] %v344_v4 }
 0x2c8   :  { %539 = shalt.err (!%p536_p6)
}
 0x2c9   :  { %s540_s5 = scalar_lea.hbm %s664_s6, 256 }
 0x2ca   :  { %p541_p7 = scmp.ne.s32.totalorder %s664_s6, %s540_s5  ;;  %p544_p8 = scmp.lt.u32.totalorder %s540_s5, %s664_s6 }
 0x2cc   :  { %p546_p9 = pnand %p544_p8, %p541_p7 }
 0x2ce   :  { %549 = shalt.err (!%p546_p9)
}
 0x2cf   :  { %s567_s15 = smov 128   ;;  %s568_s16 = smov 8  }
 0x2d0   :  { %358 = dma.vmem_to_hbm [thread:$0]  %s353_s8, 256, %s664_s6, [#allocation4], %s567_s15, %s567_s15, %s568_s16  }
 0x2d1   :  { %554 = dma.done.wait [#allocation4], 256  }
 0x2d2   :  { %555 = vsyncadd [#allocation4], 4294967040 }
 0x2d3   :  { %362 = vsyncpa [#allocation3], 1 }
 0x2d4   :  { %363 = vsyncpa [#allocation6], 1 }
 0x2d5   :  { %364 = vsyncpa [#allocation4], 1 }

</bundles_post_ra>
